<compile_context>
chip_gen: v5e
topology: v5e:2x2
jax: 0.10.0
libtpu: 0.0.40
codegen_flags: <defaults>
</compile_context>

<pallas_src>
import jax
import jax.numpy as jnp
from jax.experimental import pallas as pl
from jax.experimental.pallas import tpu as pltpu

_LANE_CHOICES = (1024, 512, 256, 128)
_SUBLANE_SAFE = 32  # valid sublane multiple for f32 (8), bf16 (16), int8/fp8 (32)


def _ste_forward_kernel(x_ref, o_ref):
    # Elementwise threshold: (x > 0) -> 1 else 0 (NaN -> 0, matching torch).
    o_ref[...] = (x_ref[...] > 0).astype(o_ref.dtype)


def _xla_ste(x, out_dtype):
    # Fallback / fusion-friendly path.
    return (x > 0).astype(out_dtype)


def ste_forward(
    x: jax.Array,
    *,
    out_dtype=jnp.float32,
    block_bytes: int = 4 * 1024 * 1024,   # ~4 MiB per f32 buffer (v7x-safe)
    min_pallas_bytes: int = 1 << 20,      # below this, let XLA handle it
) -> jax.Array:
    """(x > 0).astype(out_dtype), using a Pallas TPU kernel for large aligned inputs."""
    orig_shape = x.shape
    n = x.size
    if n == 0:
        return jnp.zeros(orig_shape, out_dtype)

    in_bytes = n * jnp.dtype(x.dtype).itemsize
    # Ragged (not lane-divisible) or small inputs: plain XLA (fuseable, no
    # extra HBM passes from padding/slicing, no launch overhead).
    if (n % 128 != 0) or (in_bytes < min_pallas_bytes):
        return _xla_ste(x, out_dtype)

    # Pick the widest lane count that divides n (wide unmasked stores).
    lanes = next(l for l in _LANE_CHOICES if n % l == 0)
    rows = n // lanes
    x2d = x.reshape(rows, lanes)

    # Block rows sized to ~block_bytes of f32 per buffer, rounded down to a
    # multiple of 32 so the tile is valid for any input dtype packing.
    block_rows = max(_SUBLANE_SAFE, (block_bytes // (lanes * 4)) // _SUBLANE_SAFE * _SUBLANE_SAFE)
    if rows <= block_rows:
        block_rows_eff = rows          # full array dims: always a legal block
        grid = (1,)
    else:
        block_rows_eff = block_rows    # multiple of 32; trailing block is masked
        grid = (pl.cdiv(rows, block_rows_eff),)

    out_itemsize = jnp.dtype(out_dtype).itemsize
    cost = pl.CostEstimate(
        flops=n,
        transcendentals=0,
        bytes_accessed=n * (jnp.dtype(x.dtype).itemsize + out_itemsize),
    )

    out2d = pl.pallas_call(
        _ste_forward_kernel,
        out_shape=jax.ShapeDtypeStruct((rows, lanes), out_dtype),
        grid=grid,
        in_specs=[pl.BlockSpec((block_rows_eff, lanes), lambda i: (i, 0))],
        out_specs=pl.BlockSpec((block_rows_eff, lanes), lambda i: (i, 0)),
        compiler_params=pltpu.CompilerParams(
            dimension_semantics=("parallel",),
            vmem_limit_bytes=32 * 1024 * 1024,
        ),
        cost_estimate=cost,
    )(x2d)

    return out2d.reshape(orig_shape)


if __name__ == "__main__":
    key = jax.random.PRNGKey(0)

    # Primary test: small NCHW input (2*4*16*16 = 2048 elems, 128-aligned).
    # Force the Pallas path so the kernel is actually compiled and run on TPU.
    x = jax.random.normal(key, (2, 4, 16, 16), dtype=jnp.float32)
    ref = (x > 0).astype(jnp.float32)
    y = ste_forward(x, min_pallas_bytes=0)          # forced Pallas path
    jax.block_until_ready(y)
    assert y.shape == x.shape and y.dtype == jnp.float32
    assert bool(jnp.all(y == ref))

    # Default path for the same small input takes the XLA bypass; must match.
    y_bypass = ste_forward(x)
    jax.block_until_ready(y_bypass)
    assert bool(jnp.all(y_bypass == ref))

    # bf16 output knob through the Pallas path (values 0/1 are exact in bf16).
    y_bf16 = ste_forward(x, out_dtype=jnp.bfloat16, min_pallas_bytes=0)
    jax.block_until_ready(y_bf16)
    assert y_bf16.dtype == jnp.bfloat16
    assert bool(jnp.all(y_bf16.astype(jnp.float32) == ref))

    # Ragged (non-128-aligned) input: XLA fallback path.
    x2 = jax.random.normal(jax.random.PRNGKey(1), (3, 5, 7), dtype=jnp.float32)
    ref2 = (x2 > 0).astype(jnp.float32)
    y2 = ste_forward(x2)
    jax.block_until_ready(y2)
    assert y2.shape == x2.shape
    assert bool(jnp.all(y2 == ref2))

    print("KERNEL_OK")
</pallas_src>

<mosaic_0001>
module attributes {stable_mosaic.version = 11 : i64} {
  func.func @_ste_forward_kernel(%arg0: i32, %arg1: memref<2x1024xf32, #tpu.memory_space<vmem>>, %arg2: memref<2x1024xf32, #tpu.memory_space<vmem>>) attributes {dimension_semantics = [#tpu.dimension_semantics<parallel>], iteration_bounds = array<i64: 1>, scalar_prefetch = 0 : i64, scratch_operands = 0 : i64, tpu.core_type = #tpu.core_type<tc>, window_params = [{transform_indices = @transform_0, window_bounds = array<i64: 2, 1024>}, {transform_indices = @transform_1, window_bounds = array<i64: 2, 1024>}]} {
    %c0 = arith.constant 0 : index
    %c0_0 = arith.constant 0 : index
    %0 = vector.load %arg1[%c0, %c0_0] : memref<2x1024xf32, #tpu.memory_space<vmem>>, vector<2x1024xf32>
    %cst = arith.constant 0.000000e+00 : f32
    %1 = vector.broadcast %cst : f32 to vector<2x1024xf32>
    %2 = arith.cmpf ogt, %0, %1 : vector<2x1024xf32>
    %3 = arith.extui %2 : vector<2x1024xi1> to vector<2x1024xi32>
    %4 = arith.sitofp %3 : vector<2x1024xi32> to vector<2x1024xf32>
    %c0_1 = arith.constant 0 : index
    %c0_2 = arith.constant 0 : index
    %5 = vector.load %arg2[%c0_1, %c0_2] : memref<2x1024xf32, #tpu.memory_space<vmem>>, vector<2x1024xf32>
    tpu.vector_store %arg2[%c0_1, %c0_2], %4 {strides = array<i32>} : memref<2x1024xf32, #tpu.memory_space<vmem>>, vector<2x1024xf32>,
    return
  }
  func.func @transform_0(%arg0: i32) -> (i32, i32) {
    %c0_i32 = arith.constant 0 : i32
    %c0_i32_0 = arith.constant 0 : i32
    return %arg0, %c0_i32 : i32, i32
  }
  func.func @transform_1(%arg0: i32) -> (i32, i32) {
    %c0_i32 = arith.constant 0 : i32
    %c0_i32_0 = arith.constant 0 : i32
    return %arg0, %c0_i32 : i32, i32
  }
}

</mosaic_0001>

<bundles_post_ra>
// kernel: tpu_custom_call.1
= control target key start
LH: loop header
LB: loop body
LE: loop exit
PB: predicated region body
PF: predicated region fallthrough
CT: control target
= control target key end

     0   :  { %6 = vsyncpa [#allocation3], 0  ;;  %s126_s0 = inlined_call_operand.hbm [shape: f32[2,1024], index: 0, kind: input, shape index: {}]   ;;  %s127_s1 = inlined_call_operand.hbm [shape: f32[2,1024], index: 1, kind: output, shape index: {}]  }
   0x1   :  { %7 = vsyncpa [#allocation4], 0  ;;  %s13_s8 = sshll.u32 %s126_s0, 4  ;;  %s107_s9 = smov [#allocation2]   ;;  %s14_s8 = int_to_ptr.hbm [resolvable:$true] %s13_s8 }
   0x2   :  { %s15_s10 = sshll.u32 %s107_s9, 4  ;;  %s16_s10 = int_to_ptr.vmem [resolvable:$true] %s15_s10 }
   0x3   :  { %18 = dma.hbm_to_vmem [thread:$0]  %s14_s8, 256, %s16_s10, [#allocation3]  }
   0x4   :  { %103 = dma.done.wait [#allocation3], 256  }
   0x5   :  { %104 = vsyncadd [#allocation3], 4294967040  ;;  %s108_s11 = smov [#allocation5]   ;;  %s40_s15 = sshll.u32 %s127_s1, 4  ;;  %v23_v0 = vld [vmem:[#allocation2] sm:$0xff]  ;;  %v24_v1 = vld [vmem:[#allocation2 + $0x8] sm:$0xff]  ;;  %s41_s15 = int_to_ptr.hbm [resolvable:$true] %s40_s15 }
   0x6   :  { %s38_s12 = sshll.u32 %s108_s11, 4  ;;  %vm25_vm0 = vcmp.gt.f32.partialorder %v23_v0, 0.0  ;;  %vm26_vm1 = vcmp.gt.f32.partialorder %v24_v1, 0.0  ;;  %v109_v2 = vmov 0.0   ;;  %s39_s12 = int_to_ptr.vmem [resolvable:$true] %s38_s12 }
   0x7   :  { %v50_v3 = vsel %vm25_vm0, 1.0, %v109_v2  ;;  %v51_v4 = vsel %vm26_vm1, 1.0, %v109_v2 }
   0x8   :  { %31 = vst [vmem:[#allocation5] sm:$0xff] %v50_v3 }
   0x9   :  { %32 = vst [vmem:[#allocation5 + $0x8] sm:$0xff] %v51_v4 }
   0xa   :  { %43 = dma.vmem_to_hbm [thread:$0]  %s39_s12, 256, %s41_s15, [#allocation4]  }
   0xb   :  { %105 = dma.done.wait [#allocation4], 256  }
   0xc   :  { %106 = vsyncadd [#allocation4], 4294967040 }
   0xd   :  { %48 = vsyncpa [#allocation3], 1 }
   0xe   :  { %49 = vsyncpa [#allocation4], 1 }

</bundles_post_ra>
